<compile_context>
chip_gen: v5e
topology: v5e:2x2
jax: 0.10.0
libtpu: 0.0.40
codegen_flags: <defaults>
</compile_context>

<pallas_src>
import jax
import jax.numpy as jnp
from jax.experimental import pallas as pl
from jax.experimental.pallas import tpu as pltpu

STATE_DIM = 3            # Pendulum-v1 observation_space.shape[0]
HIDDEN_DIM = 128
LANE = 128               # TPU lane width
TB_MAX_DEFAULT = 16384   # h = (128, tb) f32 = 8 MiB -> safe under the 32 MiB VMEM cap


def _round_up(x, m):
    return pl.cdiv(x, m) * m


def valuenet_kernel(xT_ref, w1_ref, w2_ref, b2_ref, o_ref):
    # fc1 (bias folded into K): (HIDDEN, K) @ (K, TB) -> (HIDDEN, TB) on the MXU.
    h = jnp.dot(w1_ref[...], xT_ref[...], preferred_element_type=jnp.float32)
    h = jnp.maximum(h, 0.0)                        # only the ReLU stays on the VPU
    # fc2 on the MXU as well: (1, HIDDEN) @ (HIDDEN, TB) -> (1, TB), lane-dense.
    v = jnp.dot(w2_ref[...], h, preferred_element_type=jnp.float32)
    o_ref[...] = v + b2_ref[...]                   # (1, 1) broadcast over lanes


def value_net_forward(x, w1, b1, w2, b2, *, tb_max=TB_MAX_DEFAULT):
    """ValueNet forward.  x: (B, state_dim) f32 -> (B, 1) f32.

    Parameter layout (PyTorch-native):
      w1: (hidden, state) == fc1.weight      b1: (hidden,) == fc1.bias
      w2: (1, hidden)     == fc2.weight      b2: (1,)      == fc2.bias
    """
    batch, state_dim = x.shape
    hidden = w1.shape[0]
    k_aug = state_dim + 1

    # ---- batch tiling -------------------------------------------------------
    b128 = _round_up(batch, LANE)
    tb_max = max(LANE, (tb_max // LANE) * LANE)
    if b128 <= max(LANE, tb_max // 2):
        n_tiles = 1                                 # overhead-dominated: one tile
    else:
        n_tiles = max(2, pl.cdiv(b128, tb_max))     # cap h = (128, tb) VMEM footprint
        n_tiles += n_tiles % 2                      # even count -> both v7x TCs busy
    tb = _round_up(pl.cdiv(b128, n_tiles), LANE)
    b_pad = n_tiles * tb                            # full blocks; waste < 128 cols/tile

    # ---- host-side staging (one fused XLA pass over x) ----------------------
    xT = jnp.concatenate([x, jnp.ones((batch, 1), x.dtype)], axis=1).T   # (K, B)
    if b_pad != batch:
        xT = jnp.pad(xT, ((0, 0), (0, b_pad - batch)))
    w1a = jnp.concatenate([w1, b1.reshape(hidden, 1)], axis=1)           # (hidden, K)
    w2r = w2.reshape(1, hidden)
    b2r = b2.reshape(1, 1)

    flops = 2 * b_pad * hidden * (k_aug + 1) + b_pad * (hidden + 1)
    bytes_accessed = (k_aug + 1) * 4 * b_pad + 4 * (hidden * (k_aug + 1) + hidden + 1)

    out_t = pl.pallas_call(
        valuenet_kernel,
        out_shape=jax.ShapeDtypeStruct((1, b_pad), jnp.float32),
        grid_spec=pltpu.PrefetchScalarGridSpec(
            num_scalar_prefetch=0,
            grid=(n_tiles,),
            in_specs=[
                pl.BlockSpec((k_aug, tb), lambda i: (0, i)),      # x tile, double-buf
                pl.BlockSpec((hidden, k_aug), lambda i: (0, 0)),  # resident weights
                pl.BlockSpec((1, hidden), lambda i: (0, 0)),
                pl.BlockSpec((1, 1), lambda i: (0, 0)),
            ],
            out_specs=pl.BlockSpec((1, tb), lambda i: (0, i)),    # lane-dense output
        ),
        compiler_params=pltpu.CompilerParams(
            dimension_semantics=("parallel",),      # shard batch tiles on v7x's 2 TCs
            vmem_limit_bytes=32 * 1024 * 1024,      # budgeted for h = (128, tb) f32
        ),
        cost_estimate=pl.CostEstimate(
            flops=int(flops), bytes_accessed=int(bytes_accessed), transcendentals=0),
    )(xT, w1a, w2r, b2r)

    return out_t[0, :batch].reshape(batch, 1)


def init_params(key, state_dim=STATE_DIM, hidden_dim=HIDDEN_DIM):
    """Deterministic init mimicking torch.nn.Linear (uniform +-1/sqrt(fan_in))."""
    k1, k2, k3, k4 = jax.random.split(key, 4)
    bound1 = 1.0 / float(state_dim) ** 0.5
    bound2 = 1.0 / float(hidden_dim) ** 0.5
    w1 = jax.random.uniform(k1, (hidden_dim, state_dim), jnp.float32, -bound1, bound1)
    b1 = jax.random.uniform(k2, (hidden_dim,), jnp.float32, -bound1, bound1)
    w2 = jax.random.uniform(k3, (1, hidden_dim), jnp.float32, -bound2, bound2)
    b2 = jax.random.uniform(k4, (1,), jnp.float32, -bound2, bound2)
    return w1, b1, w2, b2


def reference_forward(x, w1, b1, w2, b2):
    """Plain-XLA forward (identical math to the PyTorch module)."""
    h = jnp.maximum(x @ w1.T + b1, 0.0)
    return h @ w2.T + b2


if __name__ == "__main__":
    key = jax.random.PRNGKey(0)
    k_x1, k_x2, k_p = jax.random.split(key, 3)
    w1, b1, w2, b2 = init_params(k_p)

    # Small inference-style batch: single tile, grid=(1,).
    x_small = jax.random.normal(k_x1, (8, STATE_DIM), jnp.float32)
    out_small = jax.block_until_ready(value_net_forward(x_small, w1, b1, w2, b2))
    ref_small = reference_forward(x_small, w1, b1, w2, b2)
    assert out_small.shape == (8, 1), out_small.shape
    assert jnp.allclose(out_small, ref_small, atol=1e-4, rtol=1e-4)

    # Ragged batch exercising the multi-tile grid (tb_max=128 -> grid=(4,), tb=128)
    # plus lane-axis zero padding that is sliced off the (1, B_pad) output.
    x_big = jax.random.normal(k_x2, (300, STATE_DIM), jnp.float32)
    out_big = jax.block_until_ready(
        value_net_forward(x_big, w1, b1, w2, b2, tb_max=128))
    ref_big = reference_forward(x_big, w1, b1, w2, b2)
    assert out_big.shape == (300, 1), out_big.shape
    assert jnp.allclose(out_big, ref_big, atol=1e-4, rtol=1e-4)

    print("KERNEL_OK")
</pallas_src>

<mosaic_0001>
module attributes {stable_mosaic.version = 11 : i64} {
  func.func @valuenet_kernel(%arg0: i32, %arg1: memref<4x128xf32, #tpu.memory_space<vmem>>, %arg2: memref<128x4xf32, #tpu.memory_space<vmem>>, %arg3: memref<1x128xf32, #tpu.memory_space<vmem>>, %arg4: memref<1x1xf32, #tpu.memory_space<vmem>>, %arg5: memref<1x128xf32, #tpu.memory_space<vmem>>) attributes {dimension_semantics = [#tpu.dimension_semantics<parallel>], iteration_bounds = array<i64: 1>, scalar_prefetch = 0 : i64, scratch_operands = 0 : i64, tpu.core_type = #tpu.core_type<tc>, window_params = [{transform_indices = @transform_0, window_bounds = array<i64: 4, 128>}, {pipeline_mode = #tpu.pipeline_mode<synchronous>, transform_indices = @transform_1, window_bounds = array<i64: 128, 4>}, {pipeline_mode = #tpu.pipeline_mode<synchronous>, transform_indices = @transform_2, window_bounds = array<i64: 1, 128>}, {pipeline_mode = #tpu.pipeline_mode<synchronous>, transform_indices = @transform_3, window_bounds = array<i64: 1, 1>}, {transform_indices = @transform_4, window_bounds = array<i64: 1, 128>}]} {
    %c0 = arith.constant 0 : index
    %c0_0 = arith.constant 0 : index
    %0 = vector.load %arg2[%c0, %c0_0] : memref<128x4xf32, #tpu.memory_space<vmem>>, vector<128x4xf32>
    %c0_1 = arith.constant 0 : index
    %c0_2 = arith.constant 0 : index
    %1 = vector.load %arg1[%c0_1, %c0_2] : memref<4x128xf32, #tpu.memory_space<vmem>>, vector<4x128xf32>
    %cst = arith.constant dense<0.000000e+00> : vector<128x128xf32>
    %2 = tpu.matmul %0, %1, %cst {dimension_numbers = #tpu.dot_dimension_numbers<[1], [0], [0], [1], [0, 0, 1, 1], [], []>} : vector<128x4xf32>, vector<4x128xf32>, vector<128x128xf32> -> vector<128x128xf32>
    %cst_3 = arith.constant 0.000000e+00 : f32
    %3 = vector.broadcast %cst_3 : f32 to vector<128x128xf32>
    %4 = arith.maximumf %2, %3 : vector<128x128xf32>
    %c0_4 = arith.constant 0 : index
    %c0_5 = arith.constant 0 : index
    %5 = vector.load %arg3[%c0_4, %c0_5] : memref<1x128xf32, #tpu.memory_space<vmem>>, vector<1x128xf32>
    %cst_6 = arith.constant dense<0.000000e+00> : vector<1x128xf32>
    %6 = tpu.matmul %5, %4, %cst_6 {dimension_numbers = #tpu.dot_dimension_numbers<[1], [0], [0], [1], [0, 0, 1, 1], [], []>} : vector<1x128xf32>, vector<128x128xf32>, vector<1x128xf32> -> vector<1x128xf32>
    %c0_7 = arith.constant 0 : index
    %c0_8 = arith.constant 0 : index
    %7 = vector.load %arg4[%c0_7, %c0_8] : memref<1x1xf32, #tpu.memory_space<vmem>>, vector<1x1xf32>
    %8 = vector.broadcast %7 : vector<1x1xf32> to vector<1x128xf32>
    %9 = arith.addf %6, %8 : vector<1x128xf32>
    %c0_9 = arith.constant 0 : index
    %c0_10 = arith.constant 0 : index
    %10 = vector.load %arg5[%c0_9, %c0_10] : memref<1x128xf32, #tpu.memory_space<vmem>>, vector<1x128xf32>
    tpu.vector_store %arg5[%c0_9, %c0_10], %9 {strides = array<i32>} : memref<1x128xf32, #tpu.memory_space<vmem>>, vector<1x128xf32>,
    return
  }
  func.func @transform_0(%arg0: i32) -> (i32, i32) {
    %c0_i32 = arith.constant 0 : i32
    %c0_i32_0 = arith.constant 0 : i32
    return %c0_i32, %arg0 : i32, i32
  }
  func.func @transform_1(%arg0: i32) -> (i32, i32) {
    %c0_i32 = arith.constant 0 : i32
    %c0_i32_0 = arith.constant 0 : i32
    %c0_i32_1 = arith.constant 0 : i32
    return %c0_i32, %c0_i32_0 : i32, i32
  }
  func.func @transform_2(%arg0: i32) -> (i32, i32) {
    %c0_i32 = arith.constant 0 : i32
    %c0_i32_0 = arith.constant 0 : i32
    %c0_i32_1 = arith.constant 0 : i32
    return %c0_i32, %c0_i32_0 : i32, i32
  }
  func.func @transform_3(%arg0: i32) -> (i32, i32) {
    %c0_i32 = arith.constant 0 : i32
    %c0_i32_0 = arith.constant 0 : i32
    %c0_i32_1 = arith.constant 0 : i32
    return %c0_i32, %c0_i32_0 : i32, i32
  }
  func.func @transform_4(%arg0: i32) -> (i32, i32) {
    %c0_i32 = arith.constant 0 : i32
    %c0_i32_0 = arith.constant 0 : i32
    return %c0_i32, %arg0 : i32, i32
  }
}

</mosaic_0001>

<bundles_post_ra>
// kernel: tpu_custom_call.1
= control target key start
LH: loop header
LB: loop body
LE: loop exit
PB: predicated region body
PF: predicated region fallthrough
CT: control target
= control target key end

     0   :  { %s367_s0 = inlined_call_operand.vmem [shape: f32[4,128], index: 0, kind: input, shape index: {}]   ;;  %s368_s1 = inlined_call_operand.vmem [shape: f32[128,4], index: 1, kind: input, shape index: {}]   ;;  %s369_s2 = inlined_call_operand.vmem [shape: f32[1,128], index: 2, kind: input, shape index: {}]   ;;  %s370_s3 = inlined_call_operand.<no memory space> [shape: f32[1,1], index: 3, kind: input, shape index: {}]   ;;  %s371_s4 = inlined_call_operand.hbm [shape: f32[1,128], index: 4, kind: output, shape index: {}]  }
   0x1   :  { %v9_v0 = vstv %s370_s3 }
   0x2   :  { %10 = vst [vmem:[#allocation2] sm:$0x1] %v9_v0 }
   0x3   :  { %v36_v1 = vld [vmem:[%s367_s0] sm:$0xf]  ;;  %vm86_vm0 = vcmask 1043456   ;;  %v26_v2 = vld [vmem:[%s368_s1 + $0x30] sm:$0xff]  ;;  %vm37_vm1 = vcmask 31744  }
   0x4   :  { %v32_v3 = vld [vmem:[%s368_s1 + $0x60] sm:$0xff]  ;;  %233 = vmatpush.msk.msra.mxu2 %vm86_vm0, %v36_v1  ;;  %234 = vmatpush.msk.msra.mxu3 %vm86_vm0, %v36_v1 }
   0x5   :  { %223 = vmatmul.msk.f32.vlgmr.msra.gmra.mxu2 %vm37_vm1, %v26_v2  ;;  %229 = vmatmul.msk.f32.vlgmr.msra.gmra.mxu3 %vm37_vm1, %v32_v3  ;;  %v20_v4 = vld [vmem:[%s368_s1] sm:$0xff] }
   0x6   :  { %216 = vmatpush.msk.msra.mxu0 %vm86_vm0, %v36_v1 }
   0x7   :  { %217 = vmatmul.msk.f32.vlgmr.msra.gmra.mxu0 %vm37_vm1, %v20_v4 }
   0x8   :  { %11 = vsyncpa [#allocation4], 0  ;;  %v27_v5 = vld [vmem:[%s368_s1 + $0x38] sm:$0xff]  ;;  %v33_v6 = vld [vmem:[%s368_s1 + $0x68] sm:$0xff]  ;;  %v264_v36 = vmov 0   ;;  %s265_s23 = smov [#allocation3]  }
   0x9   :  { %v21_v7 = vld [vmem:[%s368_s1 + $0x8] sm:$0xff]  ;;  %v28_v8 = vld [vmem:[%s368_s1 + $0x40] sm:$0xff]  ;;  %v34_v9 = vld [vmem:[%s368_s1 + $0x70] sm:$0xff]  ;;  %237 = vset.pattern.permute.xlu0 %v264_v36  ;;  %s205_s0 = sshll.u32 %s265_s23, 4  ;;  %s207_s26 = sshll.u32 %s371_s4, 4  ;;  %s206_s0 = int_to_ptr.vmem [resolvable:$true] %s205_s0  ;;  %s208_s26 = int_to_ptr.hbm [resolvable:$true] %s207_s26 }
   0xa   :  { %v22_v10 = vld [vmem:[%s368_s1 + $0x10] sm:$0xff]  ;;  %v29_v11 = vld [vmem:[%s368_s1 + $0x48] sm:$0xff]  ;;  %v35_v12 = vld [vmem:[%s368_s1 + $0x78] sm:$0xff] }
   0xb   :  { %v23_v13 = vld [vmem:[%s368_s1 + $0x18] sm:$0xff]  ;;  %v30_v14 = vld [vmem:[%s368_s1 + $0x50] sm:$0xff]  ;;  %v24_v15 = vld [vmem:[%s368_s1 + $0x20] sm:$0xff] }
   0xc   :  { %v31_v16 = vld [vmem:[%s368_s1 + $0x58] sm:$0xff]  ;;  %v25_v17 = vld [vmem:[%s368_s1 + $0x28] sm:$0xff]  ;;  %v172_v35 = vld [vmem:[#allocation2] sm:$0x1] }
   0xd   :  { %224 = vmatmul.msk.f32.gmra.mxu2 %vm37_vm1, %v27_v5  ;;  %230 = vmatmul.msk.f32.gmra.mxu3 %vm37_vm1, %v33_v6  ;;  %v171_v52 = vld [vmem:[%s369_s2] sm:$0x1] }
   0xe   :  { %175 = vperm.xlu0 %237, %v172_v35  }
   0xf   :  { %218 = vmatmul.msk.f32.gmra.mxu0 %vm37_vm1, %v21_v7 }
  0x15   :  { %225 = vmatmul.msk.f32.gmra.mxu2 %vm37_vm1, %v28_v8  ;;  %231 = vmatmul.msk.f32.gmra.mxu3 %vm37_vm1, %v34_v9 }
  0x17   :  { %219 = vmatmul.msk.f32.gmra.mxu0 %vm37_vm1, %v22_v10 }
  0x1d   :  { %226 = vmatmul.msk.f32.gmra.mxu2 %vm37_vm1, %v29_v11  ;;  %232 = vmatmul.msk.f32.gmra.mxu3 %vm37_vm1, %v35_v12 }
  0x1f   :  { %220 = vmatmul.msk.f32.gmra.mxu0 %vm37_vm1, %v23_v13 }
  0x25   :  { %227 = vmatmul.msk.f32.gmra.mxu2 %vm37_vm1, %v30_v14 }
  0x27   :  { %221 = vmatmul.msk.f32.gmra.mxu0 %vm37_vm1, %v24_v15 }
  0x2d   :  { %228 = vmatmul.msk.f32.gmra.mxu2 %vm37_vm1, %v31_v16 }
  0x2f   :  { %222 = vmatmul.msk.f32.gmra.mxu0 %vm37_vm1, %v25_v17 }
  0x80   :  { %v176_v53 = vpop.permute.xlu0 %175 }
  0x81   :  { %v178_v54 = vperm.slane %v176_v53, 0 }
  0x84   :  { %v107_v18 = vpop.f32.mrf.mxu0 }
  0x85   :  { %v155_v51 = vmax.f32 %v107_v18, 0.0 }
  0x88   :  { %v125_v19 = vpop.f32.mrf.mxu2  ;;  %v143_v20 = vpop.f32.mrf.mxu3 }
  0x89   :  { %v167_v33 = vmax.f32 %v143_v20, 0.0  ;;  %v161_v45 = vmax.f32 %v125_v19, 0.0 }
  0x8c   :  { %v110_v21 = vpop.f32.mrf.mxu0 }
  0x8d   :  { %v156_v50 = vmax.f32 %v110_v21, 0.0 }
  0x90   :  { %v128_v22 = vpop.f32.mrf.mxu2  ;;  %v146_v23 = vpop.f32.mrf.mxu3 }
  0x91   :  { %v168_v32 = vmax.f32 %v146_v23, 0.0  ;;  %v162_v44 = vmax.f32 %v128_v22, 0.0 }
  0x94   :  { %v113_v26 = vpop.f32.mrf.mxu0 }
  0x95   :  { %v157_v49 = vmax.f32 %v113_v26, 0.0 }
  0x98   :  { %v131_v24 = vpop.f32.mrf.mxu2  ;;  %v149_v25 = vpop.f32.mrf.mxu3 }
  0x99   :  { %v169_v30 = vmax.f32 %v149_v25, 0.0  ;;  %v163_v42 = vmax.f32 %v131_v24, 0.0 }
  0x9c   :  { %v116_v31 = vpop.f32.mrf.mxu0 }
  0x9d   :  { %v158_v48 = vmax.f32 %v116_v31, 0.0 }
  0xa0   :  { %v134_v27 = vpop.f32.mrf.mxu2  ;;  %v152_v28 = vpop.f32.mrf.mxu3 }
  0xa1   :  { %v170_v29 = vmax.f32 %v152_v28, 0.0  ;;  %v164_v41 = vmax.f32 %v134_v27, 0.0 }
  0xa3   :  { %179 = vmatpush.msra.mxu1 %v170_v29 }
  0xa4   :  { %v119_v37 = vpop.f32.mrf.mxu0 }
  0xa5   :  { %180 = vmatpush.msra.mxu1 %v169_v30  ;;  %v159_v47 = vmax.f32 %v119_v37, 0.0 }
  0xa7   :  { %181 = vmatpush.msra.mxu1 %v168_v32 }
  0xa8   :  { %v137_v34 = vpop.f32.mrf.mxu2 }
  0xa9   :  { %182 = vmatpush.msra.mxu1 %v167_v33  ;;  %v165_v40 = vmax.f32 %v137_v34, 0.0 }
  0xac   :  { %v122_v43 = vpop.f32.mrf.mxu0 }
  0xad   :  { %v160_v46 = vmax.f32 %v122_v43, 0.0 }
  0xb0   :  { %v140_v38 = vpop.f32.mrf.mxu2 }
  0xb1   :  { %v166_v39 = vmax.f32 %v140_v38, 0.0 }
  0xb3   :  { %183 = vmatpush.msra.mxu1 %v166_v39 }
  0xb5   :  { %184 = vmatpush.msra.mxu1 %v165_v40 }
  0xb7   :  { %185 = vmatpush.msra.mxu1 %v164_v41 }
  0xb9   :  { %186 = vmatpush.msra.mxu1 %v163_v42 }
  0xbb   :  { %187 = vmatpush.msra.mxu1 %v162_v44 }
  0xbd   :  { %188 = vmatpush.msra.mxu1 %v161_v45 }
  0xbf   :  { %189 = vmatpush.msra.mxu1 %v160_v46 }
  0xc1   :  { %190 = vmatpush.msra.mxu1 %v159_v47 }
  0xc3   :  { %191 = vmatpush.msra.mxu1 %v158_v48 }
  0xc5   :  { %192 = vmatpush.msra.mxu1 %v157_v49 }
  0xc7   :  { %193 = vmatpush.msra.mxu1 %v156_v50 }
  0xc9   :  { %194 = vmatpush.msra.mxu1 %v155_v51 }
  0xca   :  { %195 = vmatmul.f32.vlgmr.msra.gmra.mxu1 %v171_v52 }
 0x147   :  { %v196_v55 = vpop.f32.mrf.mxu1 }
 0x148   :  { %v197_v56 = vadd.f32 %v196_v55, %v178_v54 }
 0x14a   :  { %199 = vst [vmem:[#allocation3] sm:$0x1] %v197_v56 }
 0x14b   :  { %210 = dma.vmem_to_hbm [thread:$0]  %s206_s0, 16, %s208_s26, [#allocation4]  }
 0x14c   :  { %262 = dma.done.wait [#allocation4], 16  }
 0x14d   :  { %263 = vsyncadd [#allocation4], 4294967280 }
 0x14e   :  { %215 = vsyncpa [#allocation4], 1 }

</bundles_post_ra>
